<compile_context>
chip_gen: v7x
topology: tpu7x:2x2x1
jax: 0.10.0
libtpu: 0.0.40
codegen_flags: <defaults>
</compile_context>

<pallas_src>
import jax
import jax.numpy as jnp
from jax.experimental import pallas as pl
from jax.experimental.pallas import tpu as pltpu


# ---------------------------------------------------------------------------
# Single-step kernel: one fused matmul + one bias add.
# ---------------------------------------------------------------------------
def _cell_fwd_kernel(xh_ref, w_ref, b_ref, out_ref):
    """out = [xt, h_prev] @ [Wa_t; Wb_t] + (A_b + B_b)."""
    acc = jnp.dot(xh_ref[...], w_ref[...], preferred_element_type=jnp.float32)
    out_ref[...] = (acc + b_ref[...]).astype(out_ref.dtype)


# ---------------------------------------------------------------------------
# Sequence kernel: grid=(T,), weights resident in VMEM, h carried in scratch.
# ---------------------------------------------------------------------------
def _seq_fwd_kernel(x_ref, h0_ref, wa_ref, wb_ref, b_ref, hs_ref, h_scr):
    t = pl.program_id(0)

    @pl.when(t == 0)
    def _():
        h_scr[...] = h0_ref[...].astype(h_scr.dtype)

    xt = x_ref[0]                      # (batch, input_size) — time dim squeezed
    h_prev = h_scr[...]                # (batch, hidden) carry, lives in VMEM
    h_new = (jnp.dot(xt, wa_ref[...], preferred_element_type=jnp.float32)
             + jnp.dot(h_prev.astype(wb_ref.dtype), wb_ref[...],
                       preferred_element_type=jnp.float32)
             + b_ref[...])
    h_scr[...] = h_new
    hs_ref[0] = h_new.astype(hs_ref.dtype)


# ---------------------------------------------------------------------------
# One-time parameter preparation (hoisted out of the per-step path).
# ---------------------------------------------------------------------------
def prepare_params(params, compute_dtype=jnp.float32):
    """Transpose / fuse / cast the cell parameters once.

    compute_dtype: dtype fed into the MXU (use jnp.bfloat16 on v6e/v7x for
    ~3x MXU throughput and half the weight DMA bytes; accumulation stays f32).
    """
    hidden = params["A_w"].shape[0]
    wa_t = params["A_w"].T.astype(compute_dtype)          # (input_size, hidden)
    wb_t = params["B_w"].T.astype(compute_dtype)          # (hidden, hidden)
    return {
        # Fused weight for the single-step kernel: (input_size + hidden, hidden)
        "W_fused": jnp.concatenate([wa_t, wb_t], axis=0),
        # Pre-summed bias, kept in f32 (bias add / epilogue stays f32).
        "b_fused": (params["A_b"] + params["B_b"]).reshape(1, hidden)
                   .astype(jnp.float32),
        # Separate weights for the fused-time-loop kernel (h is the carry,
        # so x/h cannot be pre-concatenated there).
        "Wa_t": wa_t,
        "Wb_t": wb_t,
        "h0": params["h0"].astype(jnp.float32),
        "compute_dtype": compute_dtype,
        "hidden": hidden,
    }


# ---------------------------------------------------------------------------
# Single-step forward (matches nn.Module.forward exactly).
# ---------------------------------------------------------------------------
def sla_cell_forward(xt, h_prev, prepped):
    """forward(xt, h_prev) = A(xt) + B(h_prev), via one fused MXU matmul."""
    batch = xt.shape[0]
    hidden = prepped["hidden"]
    cdt = prepped["compute_dtype"]

    xh = jnp.concatenate([xt, h_prev], axis=1).astype(cdt)  # (batch, K)

    vmem = pl.BlockSpec(memory_space=pltpu.MemorySpace.VMEM)
    return pl.pallas_call(
        _cell_fwd_kernel,
        out_shape=jax.ShapeDtypeStruct((batch, hidden), jnp.float32),
        in_specs=[vmem, vmem, vmem],
        out_specs=vmem,
    )(xh, prepped["W_fused"], prepped["b_fused"])


# ---------------------------------------------------------------------------
# Fused recurrent forward over a whole sequence in ONE pallas_call.
# ---------------------------------------------------------------------------
def sla_cell_forward_sequence(x_seq, h_init, prepped):
    """Applies forward() recurrently over x_seq: h_t = A(x_t) + B(h_{t-1}).

    Args:
      x_seq:  (T, batch, input_size)
      h_init: (batch, hidden)
    Returns:
      hs: (T, batch, hidden) — all hidden states (hs[-1] is the final state).
    """
    T, batch, input_size = x_seq.shape
    hidden = prepped["hidden"]
    cdt = prepped["compute_dtype"]

    x_seq = x_seq.astype(cdt)

    hs = pl.pallas_call(
        _seq_fwd_kernel,
        out_shape=jax.ShapeDtypeStruct((T, batch, hidden), jnp.float32),
        grid=(T,),
        in_specs=[
            # xt streamed one timestep per grid step.
            pl.BlockSpec((1, batch, input_size), lambda t: (t, 0, 0)),
            # h_init / weights / bias: constant index_map -> VMEM-resident,
            # DMA'd exactly once for the whole sequence.
            pl.BlockSpec((batch, hidden), lambda t: (0, 0)),
            pl.BlockSpec((input_size, hidden), lambda t: (0, 0)),
            pl.BlockSpec((hidden, hidden), lambda t: (0, 0)),
            pl.BlockSpec((1, hidden), lambda t: (0, 0)),
        ],
        out_specs=pl.BlockSpec((1, batch, hidden), lambda t: (t, 0, 0)),
        scratch_shapes=[pltpu.VMEM((batch, hidden), jnp.float32)],
        compiler_params=pltpu.CompilerParams(
            dimension_semantics=("arbitrary",)),  # time axis carries state
    )(x_seq, h_init, prepped["Wa_t"], prepped["Wb_t"], prepped["b_fused"])
    return hs


# ---------------------------------------------------------------------------
# Parameter init / init_hidden / pure-JAX reference.
# ---------------------------------------------------------------------------
def init_params(key, input_size, hidden_size):
    """Deterministic synthetic parameters matching the module's __init__ shapes."""
    ks = jax.random.split(key, 9)
    u = lambda k, shape, bound: jax.random.uniform(k, shape, jnp.float32, -bound, bound)
    kA = 1.0 / jnp.sqrt(input_size)
    kH = 1.0 / jnp.sqrt(hidden_size)
    return {
        "A_w": u(ks[0], (hidden_size, input_size), kA),
        "A_b": u(ks[1], (hidden_size,), kA),
        "B_w": u(ks[2], (hidden_size, hidden_size), kH),
        "B_b": u(ks[3], (hidden_size,), kH),
        # Remaining module params (decode path / init_hidden), kept for shape fidelity:
        "Ch_w": u(ks[4], (hidden_size, hidden_size), kH),
        "Ch_b": u(ks[5], (hidden_size,), kH),
        "Cx_w": u(ks[6], (input_size, hidden_size), kH),
        "Cx_b": u(ks[7], (input_size,), kH),
        "h0": jax.random.uniform(ks[8], (1, hidden_size), jnp.float32),
    }


def init_hidden(params, batch_size):
    """h0.expand(batch_size, -1) — pure broadcast, no kernel needed."""
    return jnp.broadcast_to(params["h0"], (batch_size, params["h0"].shape[1]))


def forward_ref(xt, h_prev, params):
    """Pure-JAX reference of the PyTorch forward for validation."""
    return (xt @ params["A_w"].T + params["A_b"]
            + h_prev @ params["B_w"].T + params["B_b"])


if __name__ == "__main__":
    batch, input_size, hidden_size, seq_len = 2, 16, 32, 8

    key = jax.random.PRNGKey(0)
    kp, kx, ks = jax.random.split(key, 3)
    params = init_params(kp, input_size, hidden_size)

    # Param prep done ONCE (f32 here so the reference check is tight; use
    # compute_dtype=jnp.bfloat16 in production on v6e/v7x).
    prepped = prepare_params(params, compute_dtype=jnp.float32)

    # ---- single-step forward (the module's forward) ----
    xt = jax.random.normal(kx, (batch, input_size), jnp.float32)
    h_prev = init_hidden(params, batch)                      # (batch, hidden)

    out = sla_cell_forward(xt, h_prev, prepped)
    out = jax.block_until_ready(out)

    ref = forward_ref(xt, h_prev, params)
    assert out.shape == (batch, hidden_size)
    assert jnp.allclose(out, ref, atol=1e-5, rtol=1e-5), "single-step mismatch"

    # ---- fused-time-loop forward (recurrent application of forward) ----
    x_seq = jax.random.normal(ks, (seq_len, batch, input_size), jnp.float32)
    hs = sla_cell_forward_sequence(x_seq, h_prev, prepped)
    hs = jax.block_until_ready(hs)

    h_ref = h_prev
    for t in range(seq_len):
        h_ref = forward_ref(x_seq[t], h_ref, params)
        assert jnp.allclose(hs[t], h_ref, atol=1e-4, rtol=1e-4), \
            f"sequence mismatch at step {t}"

    print("KERNEL_OK")
</pallas_src>

<mosaic_0001>
module attributes {stable_mosaic.version = 11 : i64} {
  func.func @_cell_fwd_kernel(%arg0: memref<2x48xf32, #tpu.memory_space<vmem>>, %arg1: memref<48x32xf32, #tpu.memory_space<vmem>>, %arg2: memref<1x32xf32, #tpu.memory_space<vmem>>, %arg3: memref<2x32xf32, #tpu.memory_space<vmem>>) attributes {dimension_semantics = [], scalar_prefetch = 0 : i64, scratch_operands = 0 : i64, tpu.core_type = #tpu.core_type<tc>} {
    %c0 = arith.constant 0 : index
    %c0_0 = arith.constant 0 : index
    %0 = vector.load %arg0[%c0, %c0_0] : memref<2x48xf32, #tpu.memory_space<vmem>>, vector<2x48xf32>
    %c0_1 = arith.constant 0 : index
    %c0_2 = arith.constant 0 : index
    %1 = vector.load %arg1[%c0_1, %c0_2] : memref<48x32xf32, #tpu.memory_space<vmem>>, vector<48x32xf32>
    %cst = arith.constant dense<0.000000e+00> : vector<2x32xf32>
    %2 = tpu.matmul %0, %1, %cst {dimension_numbers = #tpu.dot_dimension_numbers<[1], [0], [0], [1], [0, 0, 1, 1], [], []>} : vector<2x48xf32>, vector<48x32xf32>, vector<2x32xf32> -> vector<2x32xf32>
    %c0_3 = arith.constant 0 : index
    %c0_4 = arith.constant 0 : index
    %3 = vector.load %arg2[%c0_3, %c0_4] : memref<1x32xf32, #tpu.memory_space<vmem>>, vector<1x32xf32>
    %4 = vector.broadcast %3 : vector<1x32xf32> to vector<2x32xf32>
    %5 = arith.addf %2, %4 : vector<2x32xf32>
    %c0_5 = arith.constant 0 : index
    %c0_6 = arith.constant 0 : index
    %6 = vector.load %arg3[%c0_5, %c0_6] : memref<2x32xf32, #tpu.memory_space<vmem>>, vector<2x32xf32>
    tpu.vector_store %arg3[%c0_5, %c0_6], %5 {strides = array<i32>} : memref<2x32xf32, #tpu.memory_space<vmem>>, vector<2x32xf32>,
    return
  }
}

</mosaic_0001>

<bundles_post_ra>
// kernel: tpu_custom_call.1
= control target key start
LH: loop header
LB: loop body
LE: loop exit
PB: predicated region body
PF: predicated region fallthrough
CT: control target
= control target key end

     0   :  { %v180_v3 = vmov 0.0|0.0   ;;  %vm181_vm0 = vmmov 0   ;;  %v182_v6 = vmov 0.0   ;;  %s240_s0 = inlined_call_operand.vmem [shape: f32[2,48], index: 0, kind: input, shape index: {}]   ;;  %s241_s1 = inlined_call_operand.vmem [shape: f32[48,32], index: 1, kind: input, shape index: {}]   ;;  %s242_s2 = inlined_call_operand.vmem [shape: f32[1,32], index: 2, kind: input, shape index: {}]   ;;  %s243_s3 = inlined_call_operand.hbm [shape: f32[2,32], index: 3, kind: output, shape index: {}]  }
   0x1   :  { %v16_v0 = vld [vmem:[%s241_s1] sm:$0xff]  ;;  %v17_v1 = vld [vmem:[%s241_s1 + $0x8] sm:$0xff]  ;;  %v18_v2 = vld [vmem:[%s241_s1 + $0x10] sm:$0xff]  ;;  %143 = vmatprep.subr.bf16.mxu0 %v180_v3  ;;  %140 = vmatprep.mubr.msk.f32.mxu0 %vm181_vm0, %v182_v6 }
   0x2   :  { %v144_v4 = vpack.c.bf16 %v17_v1, %v16_v0  ;;  %v19_v5 = vld [vmem:[%s241_s1 + $0x18] sm:$0xff] }
   0x3   :  { %8 = vsyncpa [#allocation3], 0  ;;  %v147_v7 = vpack.c.bf16 %v19_v5, %v18_v2  ;;  %v20_v8 = vld [vmem:[%s241_s1 + $0x20] sm:$0xff]  ;;  %v21_v9 = vld [vmem:[%s241_s1 + $0x28] sm:$0xff]  ;;  %vm29_vm1 = vcmask 392192   ;;  %s183_s28 = smov [#allocation2]  }
   0x4   :  { %145 = vmatpush3.bf16.msra.mxu0 %v144_v4  ;;  %v150_v10 = vpack.c.bf16 %v21_v9, %v20_v8  ;;  %v15_v11 = vld [vmem:[%s240_s0] sm:$0x3]  ;;  %s111_s29 = sshll.u32 %s183_s28, 4  ;;  %vm103_vm2 = vcmask 254976   ;;  %s112_s29 = int_to_ptr.vmem [resolvable:$true] %s111_s29 }
   0x5   :  { %146 = vmatprep.subr.bf16.mxu0 %v180_v3  ;;  %v119_v12 = vld [vmem:[%s242_s2] ss:$0 sm:$0xff]  ;;  %s156_s1 = scalar_lea.vmem %s112_s29, 32  ;;  %p161_p1 = scmp.lt.s32.totalorder %s112_s29, %s112_s29 }
   0x6   :  { %p157_p0 = scmp.ne.s32.totalorder %s112_s29, %s156_s1  ;;  %p162_p2 = scmp.lt.s32.totalorder %s156_s1, %s156_s1 }
   0x8   :  { %148 = vmatpush3.bf16.msra.mxu0 %v147_v7  ;;  %p163_p3 = por %p162_p2, %p161_p1 }
   0x9   :  { %149 = vmatprep.subr.bf16.mxu0 %v180_v3 }
   0xa   :  { %p164_p4 = pnand %p163_p3, %p157_p0 }
   0xc   :  { %151 = vmatpush3.bf16.msra.mxu0 %v150_v10 }
   0xf   :  { %141 = vmatmul.mubr.msk.f32.vlgmr.msra.gmra.mrb[0].mxu0 %vm29_vm1, %v15_v11 }
  0xe2   :  { %v99_v13 = vpop.f32.mrb[0].mxu0 }
  0xe3   :  { %v100_v14 = vadd.f32 %v119_v12, %v99_v13  ;;  %v142_v15 = vpop.f32.mrb[1].mxu0 }
  0xe5   :  { %104 = vst.msk [vmem:[#allocation2] sm:$0x3] %vm103_vm2, %v100_v14 }
  0xe6   :  { %167 = shalt.err (!%p164_p4)
}
  0xe7   :  { %s168_s4 = scalar_lea.hbm %s243_s3, 32 }
  0xe8   :  { %p169_p5 = scmp.ne.s32.totalorder %s243_s3, %s168_s4  ;;  %p172_p6 = scmp.lt.u32.totalorder %s168_s4, %s243_s3 }
  0xea   :  { %p174_p7 = pnand %p172_p6, %p169_p5 }
  0xec   :  { %177 = shalt.err (!%p174_p7)
}
  0xed   :  { %114 = dma.vmem_to_hbm [thread:$0]  %s112_s29, 32, %s243_s3, [#allocation3]  }
  0xee   :  { %178 = dma.done.wait [#allocation3], 32  }
  0xef   :  { %179 = vsyncadd [#allocation3], 4294967264 }
  0xf0   :  { %118 = vsyncpa [#allocation3], 1 }

</bundles_post_ra>
